<compile_context>
chip_gen: v7x
topology: tpu7x:2x2x1
jax: 0.10.0
libtpu: 0.0.40
codegen_flags: <defaults>
</compile_context>

<pallas_src>
import jax
import jax.numpy as jnp
from jax import lax
from jax.experimental import pallas as pl
from jax.experimental.pallas import tpu as pltpu

LANES = 128


# ------------------------------ small helpers --------------------------------
def _largest_divisor(n, cap):
    """Largest power of two <= cap that divides n (>= 1)."""
    best, t = 1, 2
    while t <= min(n, cap):
        if n % t == 0:
            best = t
        t *= 2
    return best


def _stable_softplus(x):
    # softplus(x) = log(1 + exp(x)); log_sigmoid(x) = -softplus(-x).
    return jnp.maximum(x, 0.0) + jnp.log1p(jnp.exp(-jnp.abs(x)))


# ----------------------------- embedding gather ------------------------------
def _gather_rows_kernel(idx_ref, table_ref, out_ref):
    # idx_ref: SMEM (N,) int32 (scalar prefetch); table_ref: VMEM (V, E) table,
    # resident across grid steps; out_ref: VMEM (TB, E) output tile.
    tb = out_ref.shape[0]
    base = pl.program_id(0) * tb

    def copy_row(j, carry):
        row = idx_ref[base + j]
        out_ref[pl.ds(j, 1), :] = table_ref[pl.ds(row, 1), :]
        return carry

    lax.fori_loop(0, tb, copy_row, 0, unroll=(tb <= 32))


def embedding_lookup(table, idx, *, rows_per_step=None):
    """Gather rows of `table` (V, E) at int32 indices `idx` (N,) -> (N, E)."""
    n = idx.shape[0]
    v, e = table.shape
    idx = idx.astype(jnp.int32)
    if rows_per_step is None:
        rows_per_step = _largest_divisor(n, cap=64)
    tb = rows_per_step
    assert n % tb == 0, (n, tb)

    return pl.pallas_call(
        _gather_rows_kernel,
        out_shape=jax.ShapeDtypeStruct((n, e), table.dtype),
        grid_spec=pltpu.PrefetchScalarGridSpec(
            num_scalar_prefetch=1,
            grid=(n // tb,),
            # full table, constant block index -> DMA'd once, stays resident
            in_specs=[pl.BlockSpec((v, e), lambda i, idx_ref: (0, 0))],
            # unmasked (TB, E) output blocks
            out_specs=pl.BlockSpec((tb, e), lambda i, idx_ref: (i, 0)),
        ),
        compiler_params=pltpu.CompilerParams(
            dimension_semantics=("parallel",)),  # rows independent; megacore on v7x
    )(idx, table)


def skipgram_forward(word_embedding, output_embedding, target_idx, context_idx,
                     *, rows_per_step=None):
    """SkipgramModel.forward: (word_embedding[target], output_embedding[context])."""
    target_vectors = embedding_lookup(word_embedding, target_idx,
                                      rows_per_step=rows_per_step)
    context_vectors = embedding_lookup(output_embedding, context_idx,
                                       rows_per_step=rows_per_step)
    return target_vectors, context_vectors


# --------------------------- negative-sampling loss ---------------------------
def _pick_batch_tile(b, e, k, v, table_itemsize, vec_itemsize):
    """VMEM-aware batch tile: counts widened copies, scratch and resident table."""
    del k  # K handled via 2-D per-sample tiles; no 3-D temporaries remain
    try:
        vmem_cap = pltpu.get_tpu_info().vmem_capacity_bytes
    except Exception:
        vmem_cap = 64 * 1024 * 1024          # v7x physical VMEM per TensorCore
    budget = vmem_cap // 4                   # headroom for compiler temporaries
    table_bytes = v * e * table_itemsize
    for tb in (512, 256, 128, 64, 32, 16, 8):
        if b % tb:
            continue
        tile_bytes = (2 * 2 * tb * e * vec_itemsize   # double-buffered t, c tiles
                      + 2 * tb * e * 4                # f32-widened t, c
                      + tb * e * table_itemsize       # gathered noise-row scratch
                      + 3 * tb * e * 4                # live f32 product/result temps
                      + table_bytes)                  # resident embedding table
        if tile_bytes <= budget:
            return tb
    return b                                  # tiny / odd batches: single tile


def negative_sampling_loss(target, context, output_embedding, noise_idx,
                           *, n_samples, tb=None):
    """Skip-gram negative-sampling loss with the noise gather fused in.

    target/context: (B, E) vectors (storage dtype kept over the DMA, widened to
    f32 in-register), output_embedding: (V, E) table (resident in VMEM),
    noise_idx: (B * n_samples,) int32 in row-major (b, k) layout.
    Returns scalar f32:
        mean_b [ log sigmoid(<c_b, t_b>) + sum_k softplus(<z_bk, t_b>) ]
    (negation of the noise dot folded into the softplus argument).
    """
    b, e = target.shape
    v, _ = output_embedding.shape
    k = n_samples
    assert noise_idx.shape[0] == b * k
    noise_idx = noise_idx.astype(jnp.int32)

    if tb is None:
        tb = _pick_batch_tile(b, e, k, v,
                              jnp.dtype(output_embedding.dtype).itemsize,
                              jnp.dtype(target.dtype).itemsize)
    assert b % tb == 0, (b, tb)
    num_tiles = b // tb

    def loss_kernel(nidx_ref, target_ref, context_ref, table_ref, out_ref, z_ref):
        t = target_ref[...].astype(jnp.float32)       # (tb, e)
        c = context_ref[...].astype(jnp.float32)      # (tb, e)

        # Lane (E-axis) reduction on the MXU instead of jnp.sum(axis=-1):
        # frees the XLU (2 slots) which otherwise binds on v6e/v7x.
        ones_red = jnp.ones((e, LANES), jnp.float32)

        def lane_sum(x):                              # (tb, e) -> (tb, 1)
            return jnp.dot(x, ones_red,
                           preferred_element_type=jnp.float32)[:, :1]

        # positive term: log sigmoid(<c, t>) = -softplus(-<c, t>)
        total = -_stable_softplus(-lane_sum(c * t))   # (tb, 1)

        # noise term: sum_k softplus(<z_k, t>); K unrolled statically with 2-D
        # (tb, e) tiles -> no (tb, K, e) temporary, no sublane-padded K axis.
        base = pl.program_id(0) * tb * k
        for kk in range(k):
            def gather_row(j, carry, _kk=kk):
                row = nidx_ref[base + j * k + _kk]
                z_ref[pl.ds(j, 1), :] = table_ref[pl.ds(row, 1), :]
                return carry
            lax.fori_loop(0, tb, gather_row, 0, unroll=(tb <= 32))
            z = z_ref[...].astype(jnp.float32)
            total = total + _stable_softplus(lane_sum(z * t))

        # one per-tile partial sum per grid step (lane-broadcast), not (tb, 128)
        out_ref[...] = jnp.broadcast_to(jnp.sum(total), out_ref.shape)

    partial = pl.pallas_call(
        loss_kernel,
        out_shape=jax.ShapeDtypeStruct((num_tiles, LANES), jnp.float32),
        grid_spec=pltpu.PrefetchScalarGridSpec(
            num_scalar_prefetch=1,
            grid=(num_tiles,),
            in_specs=[
                pl.BlockSpec((tb, e), lambda i, nidx: (i, 0)),   # target tile
                pl.BlockSpec((tb, e), lambda i, nidx: (i, 0)),   # context tile
                pl.BlockSpec((v, e), lambda i, nidx: (0, 0)),    # table (resident)
            ],
            out_specs=pl.BlockSpec((1, LANES), lambda i, nidx: (i, 0)),
            scratch_shapes=[pltpu.VMEM((tb, e), output_embedding.dtype)],
        ),
        compiler_params=pltpu.CompilerParams(
            dimension_semantics=("parallel",)),
    )(noise_idx, target, context, output_embedding)

    # tiny final reduction in the wrapper: mean over the full batch
    return jnp.sum(partial[:, 0]) / b


# -------------------------------- references ---------------------------------
def _forward_reference(word_embedding, output_embedding, target_idx, context_idx):
    return (jnp.take(word_embedding, target_idx, axis=0),
            jnp.take(output_embedding, context_idx, axis=0))


def _loss_reference(target, context, noise):
    pos = jnp.einsum('be,be->b', context, target)
    w = jnp.log(jax.nn.sigmoid(pos))
    neg = jnp.einsum('bke,be->bk', -noise, target)
    n = jnp.log(jax.nn.sigmoid(neg))
    return jnp.mean(w - jnp.sum(n, axis=-1))


if __name__ == "__main__":
    # Small shapes consistent with the module: vocab=64, embed=128 (lane-sized),
    # batch=32, n_samples=5 (generate_noise default).
    V, E, B, K = 64, 128, 32, 5

    key = jax.random.PRNGKey(0)
    k_w, k_o, k_t, k_c, k_d, k_n = jax.random.split(key, 6)

    # nn.Embedding weights, uniform_(-1, 1) as in __init__.
    word_embedding = jax.random.uniform(k_w, (V, E), jnp.float32, -1.0, 1.0)
    output_embedding = jax.random.uniform(k_o, (V, E), jnp.float32, -1.0, 1.0)

    target_idx = jax.random.randint(k_t, (B,), 0, V, dtype=jnp.int32)
    context_idx = jax.random.randint(k_c, (B,), 0, V, dtype=jnp.int32)

    # generate_noise index sampling stays in plain JAX.
    # TODO(synk): torch.multinomial has no Pallas equivalent; only the embedding
    # gathers and the loss math run in Pallas.
    noise_distribution = jax.random.uniform(k_d, (V,), jnp.float32, 0.1, 1.0)
    noise_idx = jax.random.categorical(
        k_n, jnp.log(noise_distribution), shape=(B * K,)).astype(jnp.int32)

    # --- SkipgramModel.forward (batched Pallas gather kernels) ---
    target_vectors, context_vectors = skipgram_forward(
        word_embedding, output_embedding, target_idx, context_idx,
        rows_per_step=8)
    jax.block_until_ready((target_vectors, context_vectors))

    ref_t, ref_c = _forward_reference(
        word_embedding, output_embedding, target_idx, context_idx)
    assert jnp.array_equal(target_vectors, ref_t), "target_vectors mismatch"
    assert jnp.array_equal(context_vectors, ref_c), "context_vectors mismatch"

    # --- fused negative-sampling loss: noise gathered inside the kernel ---
    loss = jax.block_until_ready(
        negative_sampling_loss(target_vectors, context_vectors,
                               output_embedding, noise_idx,
                               n_samples=K, tb=8))
    noise_ref = jnp.take(output_embedding, noise_idx, axis=0).reshape(B, K, E)
    ref_loss = jax.block_until_ready(
        _loss_reference(target_vectors, context_vectors, noise_ref))
    # The MXU ones-matrix lane reduction uses bf16 passes at default f32 matmul
    # precision, so allow ~1e-2 slack against the exact-f32 reference.
    assert jnp.allclose(loss, ref_loss, atol=2e-2, rtol=2e-2), (loss, ref_loss)

    print("KERNEL_OK")
</pallas_src>

<mosaic_0001>
module attributes {stable_mosaic.version = 11 : i64} {
  func.func @_gather_rows_kernel(%arg0: i32, %arg1: memref<32xi32, #tpu.memory_space<smem>>, %arg2: memref<64x128xf32, #tpu.memory_space<vmem>>, %arg3: memref<8x128xf32, #tpu.memory_space<vmem>>) attributes {dimension_semantics = [#tpu.dimension_semantics<parallel>], iteration_bounds = array<i64: 4>, scalar_prefetch = 1 : i64, scratch_operands = 0 : i64, tpu.core_type = #tpu.core_type<tc>, window_params = [{pipeline_mode = #tpu.pipeline_mode<synchronous>, transform_indices = @transform_0, window_bounds = array<i64: 64, 128>}, {transform_indices = @transform_1, window_bounds = array<i64: 8, 128>}]} {
    %c8_i32 = arith.constant 8 : i32
    %0 = arith.muli %arg0, %c8_i32 : i32
    %c0_i32 = arith.constant 0 : i32
    %1 = arith.addi %0, %c0_i32 : i32
    %2 = arith.index_cast %1 : i32 to index
    %3 = memref.load %arg1[%2] : memref<32xi32, #tpu.memory_space<smem>>
    %4 = arith.index_cast %3 : i32 to index
    %c0 = arith.constant 0 : index
    %5 = vector.load %arg2[%4, %c0] : memref<64x128xf32, #tpu.memory_space<vmem>>, vector<1x128xf32>
    %6 = arith.index_cast %c0_i32 : i32 to index
    %c0_0 = arith.constant 0 : index
    %7 = vector.load %arg3[%6, %c0_0] : memref<8x128xf32, #tpu.memory_space<vmem>>, vector<1x128xf32>
    tpu.vector_store %arg3[%6, %c0_0], %5 {strides = array<i32>} : memref<8x128xf32, #tpu.memory_space<vmem>>, vector<1x128xf32>,
    %c1_i32 = arith.constant 1 : i32
    %8 = arith.addi %0, %c1_i32 : i32
    %9 = arith.index_cast %8 : i32 to index
    %10 = memref.load %arg1[%9] : memref<32xi32, #tpu.memory_space<smem>>
    %11 = arith.index_cast %10 : i32 to index
    %c0_1 = arith.constant 0 : index
    %12 = vector.load %arg2[%11, %c0_1] : memref<64x128xf32, #tpu.memory_space<vmem>>, vector<1x128xf32>
    %13 = arith.index_cast %c1_i32 : i32 to index
    %c0_2 = arith.constant 0 : index
    %14 = vector.load %arg3[%13, %c0_2] : memref<8x128xf32, #tpu.memory_space<vmem>>, vector<1x128xf32>
    tpu.vector_store %arg3[%13, %c0_2], %12 {strides = array<i32>} : memref<8x128xf32, #tpu.memory_space<vmem>>, vector<1x128xf32>,
    %c2_i32 = arith.constant 2 : i32
    %15 = arith.addi %0, %c2_i32 : i32
    %16 = arith.index_cast %15 : i32 to index
    %17 = memref.load %arg1[%16] : memref<32xi32, #tpu.memory_space<smem>>
    %18 = arith.index_cast %17 : i32 to index
    %c0_3 = arith.constant 0 : index
    %19 = vector.load %arg2[%18, %c0_3] : memref<64x128xf32, #tpu.memory_space<vmem>>, vector<1x128xf32>
    %20 = arith.index_cast %c2_i32 : i32 to index
    %c0_4 = arith.constant 0 : index
    %21 = vector.load %arg3[%20, %c0_4] : memref<8x128xf32, #tpu.memory_space<vmem>>, vector<1x128xf32>
    tpu.vector_store %arg3[%20, %c0_4], %19 {strides = array<i32>} : memref<8x128xf32, #tpu.memory_space<vmem>>, vector<1x128xf32>,
    %c3_i32 = arith.constant 3 : i32
    %22 = arith.addi %0, %c3_i32 : i32
    %23 = arith.index_cast %22 : i32 to index
    %24 = memref.load %arg1[%23] : memref<32xi32, #tpu.memory_space<smem>>
    %25 = arith.index_cast %24 : i32 to index
    %c0_5 = arith.constant 0 : index
    %26 = vector.load %arg2[%25, %c0_5] : memref<64x128xf32, #tpu.memory_space<vmem>>, vector<1x128xf32>
    %27 = arith.index_cast %c3_i32 : i32 to index
    %c0_6 = arith.constant 0 : index
    %28 = vector.load %arg3[%27, %c0_6] : memref<8x128xf32, #tpu.memory_space<vmem>>, vector<1x128xf32>
    tpu.vector_store %arg3[%27, %c0_6], %26 {strides = array<i32>} : memref<8x128xf32, #tpu.memory_space<vmem>>, vector<1x128xf32>,
    %c4_i32 = arith.constant 4 : i32
    %29 = arith.addi %0, %c4_i32 : i32
    %30 = arith.index_cast %29 : i32 to index
    %31 = memref.load %arg1[%30] : memref<32xi32, #tpu.memory_space<smem>>
    %32 = arith.index_cast %31 : i32 to index
    %c0_7 = arith.constant 0 : index
    %33 = vector.load %arg2[%32, %c0_7] : memref<64x128xf32, #tpu.memory_space<vmem>>, vector<1x128xf32>
    %34 = arith.index_cast %c4_i32 : i32 to index
    %c0_8 = arith.constant 0 : index
    %35 = vector.load %arg3[%34, %c0_8] : memref<8x128xf32, #tpu.memory_space<vmem>>, vector<1x128xf32>
    tpu.vector_store %arg3[%34, %c0_8], %33 {strides = array<i32>} : memref<8x128xf32, #tpu.memory_space<vmem>>, vector<1x128xf32>,
    %c5_i32 = arith.constant 5 : i32
    %36 = arith.addi %0, %c5_i32 : i32
    %37 = arith.index_cast %36 : i32 to index
    %38 = memref.load %arg1[%37] : memref<32xi32, #tpu.memory_space<smem>>
    %39 = arith.index_cast %38 : i32 to index
    %c0_9 = arith.constant 0 : index
    %40 = vector.load %arg2[%39, %c0_9] : memref<64x128xf32, #tpu.memory_space<vmem>>, vector<1x128xf32>
    %41 = arith.index_cast %c5_i32 : i32 to index
    %c0_10 = arith.constant 0 : index
    %42 = vector.load %arg3[%41, %c0_10] : memref<8x128xf32, #tpu.memory_space<vmem>>, vector<1x128xf32>
    tpu.vector_store %arg3[%41, %c0_10], %40 {strides = array<i32>} : memref<8x128xf32, #tpu.memory_space<vmem>>, vector<1x128xf32>,
    %c6_i32 = arith.constant 6 : i32
    %43 = arith.addi %0, %c6_i32 : i32
    %44 = arith.index_cast %43 : i32 to index
    %45 = memref.load %arg1[%44] : memref<32xi32, #tpu.memory_space<smem>>
    %46 = arith.index_cast %45 : i32 to index
    %c0_11 = arith.constant 0 : index
    %47 = vector.load %arg2[%46, %c0_11] : memref<64x128xf32, #tpu.memory_space<vmem>>, vector<1x128xf32>
    %48 = arith.index_cast %c6_i32 : i32 to index
    %c0_12 = arith.constant 0 : index
    %49 = vector.load %arg3[%48, %c0_12] : memref<8x128xf32, #tpu.memory_space<vmem>>, vector<1x128xf32>
    tpu.vector_store %arg3[%48, %c0_12], %47 {strides = array<i32>} : memref<8x128xf32, #tpu.memory_space<vmem>>, vector<1x128xf32>,
    %c7_i32 = arith.constant 7 : i32
    %50 = arith.addi %0, %c7_i32 : i32
    %51 = arith.index_cast %50 : i32 to index
    %52 = memref.load %arg1[%51] : memref<32xi32, #tpu.memory_space<smem>>
    %53 = arith.index_cast %52 : i32 to index
    %c0_13 = arith.constant 0 : index
    %54 = vector.load %arg2[%53, %c0_13] : memref<64x128xf32, #tpu.memory_space<vmem>>, vector<1x128xf32>
    %55 = arith.index_cast %c7_i32 : i32 to index
    %c0_14 = arith.constant 0 : index
    %56 = vector.load %arg3[%55, %c0_14] : memref<8x128xf32, #tpu.memory_space<vmem>>, vector<1x128xf32>
    tpu.vector_store %arg3[%55, %c0_14], %54 {strides = array<i32>} : memref<8x128xf32, #tpu.memory_space<vmem>>, vector<1x128xf32>,
    %c8_i32_15 = arith.constant 8 : i32
    return
  }
  func.func @transform_0(%arg0: i32, %arg1: memref<32xi32, #tpu.memory_space<smem>>) -> (i32, i32) {
    %c0_i32 = arith.constant 0 : i32
    %c0_i32_0 = arith.constant 0 : i32
    %c0_i32_1 = arith.constant 0 : i32
    return %c0_i32, %c0_i32_0 : i32, i32
  }
  func.func @transform_1(%arg0: i32, %arg1: memref<32xi32, #tpu.memory_space<smem>>) -> (i32, i32) {
    %c0_i32 = arith.constant 0 : i32
    %c0_i32_0 = arith.constant 0 : i32
    return %arg0, %c0_i32 : i32, i32
  }
}

</mosaic_0001>

<bundles_post_ra>
// kernel: tpu_custom_call.1
= control target key start
LH: loop header
LB: loop body
LE: loop exit
PB: predicated region body
PF: predicated region fallthrough
CT: control target
= control target key end

     0   :  { %s575_s0 = inlined_call_operand.hbm [shape: s32[32], index: 0, kind: input, shape index: {}]   ;;  %s576_s1 = inlined_call_operand.hbm [shape: f32[64,128], index: 1, kind: input, shape index: {}]   ;;  %s577_s2 = inlined_call_operand.hbm [shape: f32[32,128], index: 2, kind: output, shape index: {}]  }
   0x1   :  { %s300_s11 = scalar_lea.hbm %s575_s0, 16 }
   0x2   :  { %p301_p0 = scmp.ne.s32.totalorder %s575_s0, %s300_s11  ;;  %p304_p1 = scmp.lt.u32.totalorder %s300_s11, %s575_s0 }
   0x4   :  { %p306_p2 = pnand %p304_p1, %p301_p0 }
   0x6   :  { %309 = shalt.err (!%p306_p2)  }
   0x7   :  { %s408_s16 = smov [#allocation3]  }
   0x8   :  { %8 = dma.hbm_to_smem %s575_s0, 16, %s408_s16, [#allocation2] }
   0x9   :  { %382 = dma.done.wait [#allocation2], 16 }
   0xa   :  { %383 = vsyncadd [#allocation2], 4294967280 }
   0xb   :  { %10 = sfence }
   0xc   :  { %11 = vsyncpa [#allocation5], 0 }
   0xd   :  { %12 = vsyncpa [#allocation6], 0 }
   0xe   :  { %14 = vsyncpa [#allocation6 + $0x1], 0  ;;  %s440_s19 = smov 0   ;;  %s442_s20 = smov 0  }
   0xf   :  { %s444_s21 = smov 0   ;;  %s446_s22 = smov 0  }
  0x10 LB: > { %s461_s0 = sadd.s32 4294967295, %s406_s22   ;;  %s236_s23 = sadd.s32 4294967294, %s406_s22   ;;  %s406_s22 = sphi %s446_s22, %s595_s22   ;;  %s402_s21 = sphi %s444_s21, %s594_s21   ;;  %s398_s20 = sphi %s442_s20, %s593_s20   ;;  %s394_s19 = sphi %s440_s19, %s592_s19  }
  0x11   : > { %s465_s24 = sadd.s32 1, %s406_s22   ;;  %s48_s25 = sadd.s32 1, %s402_s21 }
  0x12   : > { %s45_s26 = ssub.s32 %s406_s22, %s465_s24  ;;  %p58_p3 = scmp.ne.s32.totalorder %s402_s21, %s398_s20 }
  0x13   : > { %p46_p4 = scmp.eq.s32.totalorder %s45_s26, 0  ;;  %p59_p5 = scmp.eq.s32.totalorder %s461_s0, 3 }
  0x14   : > { %p64_p6 = scmp.ne.s32.totalorder %s398_s20, %s394_s19  ;;  %p65_p7 = scmp.eq.s32.totalorder %s236_s23, 3 }
  0x15   : > { %s476_s27 = scalar_select %p46_p4, %s402_s21, %s48_s25  }
  0x16   : > { %p478_p8 = por %p59_p5, %p58_p3  ;;  %p482_p9 = por %p65_p7, %p64_p6 }
  0x17   : > { %p237_p10 = scmp.ge.s32.totalorder %s406_s22, 1  ;;  %p72_p11 = scmp.lt.s32.totalorder %s406_s22, 5 }
  0x18   : > { %s582_s28 = scalar_select %p478_p8, 1, 0 }
  0x19   : > { %s583_s29 = scalar_select %p482_p9, 1, 0 }
  0x1a   : > { %p578_p12 = scmp.eq.s32.totalorder %s461_s0, 0  ;;  %p489_p13 = pnand %p237_p10, %p72_p11 }
  0x1b   : > { %s409_s3 = smov [#allocation4]   ;;  %s310_s8 = scalar_lea.hbm %s576_s1, 1024 }
  0x1c   : > { %s584_s30 = scalar_select %p489_p13, 1, 0 }
  0x1d   : > { %s84_s4 = sshll.u32 %s409_s3, 4  ;;  %p253_p0 = pneg %p489_p13  ;;  %s85_s4 = int_to_ptr.vmem [resolvable:$true] %s84_s4 }
  0x1e   : > { %p311_p2 = scmp.ne.s32.totalorder %s576_s1, %s310_s8  ;;  %p317_p6 = scmp.lt.u32.totalorder %s310_s8, %s576_s1 }
  0x1f   : > { %p497_p1 = pnand %p578_p12, %p253_p0 }
  0x21   : > { %p312_p3 = pneg %p497_p1 }
  0x23   : > { %p313_p4 = pnand %p312_p3, %p311_p2 }
  0x25   : > { %p314_p5 = pneg %p313_p4 }
  0x27   : > { %p319_p7 = pnand %p317_p6, %p314_p5 }
  0x29   : > { %322 = shalt.err (!%p319_p7)
}
  0x2a   : > { %s323_s13 = scalar_lea.vmem %s85_s4, 1024  ;;  %p331_p12 = scmp.lt.s32.totalorder %s85_s4, %s85_s4 }
  0x2b   : > { %p324_p10 = scmp.ne.s32.totalorder %s85_s4, %s323_s13  ;;  %p332_p9 = scmp.lt.s32.totalorder %s323_s13, %s323_s13 }
  0x2d   : > { %p326_p11 = pnand %p324_p10, %p312_p3  ;;  %p333_p8 = por %p332_p9, %p331_p12 }
  0x2f   : > { %p327_p0 = pneg %p326_p11 }
  0x31   : > { %p334_p13 = pnand %p333_p8, %p327_p0 }
  0x33   : > { %337 = shalt.err (!%p334_p13)
}
  0x34   : > { %s410_s14 = smov 128   ;;  %s411_s15 = smov 8  }
  0x35   : > { %256 = dma.hbm_to_vmem [thread:$0]  (!%p497_p1), %s576_s1, 1024, %s85_s4, [#allocation5], %s410_s14, %s410_s14, %s411_s15  }
  0x36   : > { %p586_p2 = scmp.ne.s32.totalorder %s584_s30, 0 }
  0x37   : > { %p587_p4 = scmp.eq.s32.totalorder (!%p586_p2), %s461_s0, 0 }
  0x38   : > { %100 = sbr.rel (%p586_p2) target bundleno = 103 (0x67), region = 24 }
  0x3f   : > { %385 = dma.done.wait (%p587_p4), [#allocation5], 1024   ;;  %p588_p3 = pmov %p587_p4 }
  0x40   : > { %s581_s18 = sand.u32 1, %s398_s20   ;;  %s242_s23 = sshll.u32 %s461_s0, 3 }
  0x41   : > { %387 = vsyncadd (%p588_p3), [#allocation5], 4294966272  ;;  %s241_s25 = sshll.u32 %s581_s18, 3  ;;  %s116_s26 = sld [smem:[#allocation3 + %s242_s23]] }
  0x42   : > { %s120_s3 = sadd.s32 1, %s242_s23  ;;  %s125_s5 = sadd.s32 2, %s242_s23 }
  0x43   : > { %s121_s4 = sld [smem:[#allocation3 + %s120_s3]]  ;;  %s130_s30 = sadd.s32 3, %s242_s23 }
  0x44   : > { %s126_s6 = sld [smem:[#allocation3 + %s125_s5]]  ;;  %s135_s7 = sadd.s32 4, %s242_s23 }
  0x45   : > { %s131_s8 = sld [smem:[#allocation3 + %s130_s30]]  ;;  %s140_s10 = sadd.s32 5, %s242_s23 }
  0x46   : > { %s136_s9 = sld [smem:[#allocation3 + %s135_s7]]  ;;  %s145_s13 = sadd.s32 6, %s242_s23 }
  0x47   : > { %s117_s11 = scalar_lea.vmem [#allocation4], %s116_s26  ;;  %s141_s12 = sld [smem:[#allocation3 + %s140_s10]] }
  0x48   : > { %v118_v0 = vld [vmem:[%s117_s11] sm:$0x1]  ;;  %s114_s14 = scalar_lea.vmem [#allocation7], %s241_s25  ;;  %s146_s15 = sld [smem:[#allocation3 + %s145_s13]] }
  0x49   : > { %119 = vst [vmem:[%s114_s14] sm:$0x1] %v118_v0  ;;  %s150_s16 = sadd.s32 7, %s242_s23  ;;  %s122_s17 = scalar_lea.vmem [#allocation4], %s121_s4 }
  0x4a   : > { %v123_v1 = vld [vmem:[%s122_s17] sm:$0x1]  ;;  %s127_s18 = scalar_lea.vmem [#allocation4], %s126_s6  ;;  %s151_s3 = sld [smem:[#allocation3 + %s150_s16]] }
  0x4b   : > { %v128_v2 = vld [vmem:[%s127_s18] sm:$0x1]  ;;  %124 = vst [vmem:[%s114_s14 + $0x1] sm:$0x1] %v123_v1  ;;  %s132_s5 = scalar_lea.vmem [#allocation4], %s131_s8  ;;  %s244_s26 = sshll.u32 %s461_s0, 7 }
  0x4c   : > { %129 = vst [vmem:[%s114_s14 + $0x2] sm:$0x1] %v128_v2  ;;  %v133_v3 = vld [vmem:[%s132_s5] sm:$0x1]  ;;  %s137_s30 = scalar_lea.vmem [#allocation4], %s136_s9  ;;  %s169_s25 = sshll.u32 %s114_s14, 4  ;;  %s533_s25 = int_to_ptr.vmem [resolvable:$true] %s169_s25 }
  0x4d   : > { %v138_v4 = vld [vmem:[%s137_s30] sm:$0x1]  ;;  %134 = vst [vmem:[%s114_s14 + $0x3] sm:$0x1] %v133_v3  ;;  %s142_s7 = scalar_lea.vmem [#allocation4], %s141_s12  ;;  %s531_s6 = scalar_lea.hbm %s577_s2, %s244_s26 }
  0x4e   : > { %139 = vst [vmem:[%s114_s14 + $0x4] sm:$0x1] %v138_v4  ;;  %v143_v5 = vld [vmem:[%s142_s7] sm:$0x1]  ;;  %s147_s23 = scalar_lea.vmem [#allocation4], %s146_s15  ;;  %s589_s8 = sand.u32 1, %s398_s20  }
  0x4f   : > { %144 = vst [vmem:[%s114_s14 + $0x5] sm:$0x1] %v143_v5  ;;  %v148_v6 = vld [vmem:[%s147_s23] sm:$0x1]  ;;  %s156_s9 = scalar_lea.sflag [#allocation6], %s589_s8  ;;  %s338_s10 = scalar_lea.vmem %s533_s25, 128 }
  0x50   : > { %149 = vst [vmem:[%s114_s14 + $0x6] sm:$0x1] %v148_v6  ;;  %s152_s0 = scalar_lea.vmem [#allocation4], %s151_s3  ;;  %p339_p8 = scmp.ne.s32.totalorder %s533_s25, %s338_s10 }
  0x51   : > { %v153_v7 = vld [vmem:[%s152_s0] sm:$0x1]  ;;  %p590_p9 = scmp.ne.s32.totalorder %s582_s28, 0  ;;  %s412_s11 = smov [#allocation7]  }
  0x52   : > { %154 = vst [vmem:[%s114_s14 + $0x7] sm:$0x1] %v153_v7  ;;  %s342_s12 = sshll.u32 %s412_s11, 4  ;;  %s343_s12 = int_to_ptr.vmem [resolvable:$false] %s342_s12 }
  0x53   : > { %p340_p12 = pnand %p339_p8, %p590_p9  ;;  %s344_s13 = scalar_lea.vmem %s343_s12, 256 }
  0x54   : > { %p345_p1 = scmp.lt.s32.totalorder %s533_s25, %s343_s12  ;;  %p346_p5 = scmp.lt.s32.totalorder %s344_s13, %s338_s10 }
  0x55   : > { %p341_p13 = pneg %p340_p12 }
  0x56   : > { %p347_p6 = por %p346_p5, %p345_p1 }
  0x58   : > { %p348_p7 = pnand %p347_p6, %p341_p13 }
  0x5a   : > { %351 = shalt.err (!%p348_p7)
}
  0x5b   : > { %s352_s14 = scalar_lea.hbm %s531_s6, 128  ;;  %s356_s17 = scalar_lea.hbm %s577_s2, 512 }
  0x5c   : > { %p353_p10 = scmp.ne.s32.totalorder %s531_s6, %s352_s14  ;;  %p357_p2 = scmp.lt.u32.totalorder %s531_s6, %s577_s2 }
  0x5d   : > { %p358_p4 = scmp.lt.u32.totalorder %s356_s17, %s352_s14  ;;  %p360_p8 = scmp.lt.u32.totalorder %s352_s14, %s531_s6 }
  0x5e   : > { %p354_p11 = pnand %p353_p10, %p590_p9 }
  0x5f   : > { %p359_p3 = por %p358_p4, %p357_p2 }
  0x60   : > { %p355_p0 = pneg %p354_p11 }
  0x61   : > { %p361_p12 = por %p360_p8, %p359_p3 }
  0x63   : > { %p362_p13 = pnand %p361_p12, %p355_p0 }
  0x65   : > { %365 = shalt.err (!%p362_p13)
}
  0x66   : > { %251 = dma.vmem_to_hbm [thread:$0]  (%p590_p9), %s533_s25, 128, %s531_s6, %s156_s9  }
  0x67 PF: > { %p263_p1 = scmp.ge.s32.totalorder %s406_s22, 2  ;;  %s181_s30 = sand.u32 1, %s394_s19  }
  0x68   : > { %p591_p5 = scmp.ne.s32.totalorder %s583_s29, 0  ;;  %s182_s26 = scalar_lea.sflag [#allocation6], %s181_s30 }
  0x6a   : > { %p258_p6 = pnand %p263_p1, %p591_p5 }
  0x6c   : > { %389 = dma.done.wait (!%p258_p6), %s182_s26, 128  }
  0x6d   : > { %391 = vsyncadd (!%p258_p6), %s182_s26, 4294967168  ;;  %p17_p7 = scmp.ge.s32.totalorder %s465_s24, 6   ;;  %s592_s19 = smov %s398_s20 }
  0x6e   : > { %s593_s20 = smov %s402_s21  ;;  %s594_s21 = smov %s476_s27 }
  0x6f   : > { %s595_s22 = smov %s465_s24  ;;  %19 = sbr.rel (!%p17_p7) target bundleno = 16 (0x10), region = 69 }
  0x76   :  { %187 = vsyncpa [#allocation5], 1 }
  0x77   :  { %189 = vsyncpa [#allocation5 + $0x1], 1 }
  0x78   :  { %190 = vsyncpa [#allocation6], 1 }
  0x79   :  { %192 = vsyncpa [#allocation6 + $0x1], 1 }

</bundles_post_ra>
